<compile_context>
chip_gen: v5e
topology: v5e:2x2
jax: 0.10.0
libtpu: 0.0.40
codegen_flags: <defaults>
</compile_context>

<pallas_src>
import jax
import jax.numpy as jnp
from jax.experimental import pallas as pl
from jax.experimental.pallas import tpu as pltpu

_LANE = 128
_SUBLANE = 8
_EPS = 1e-5


def _round_up(n, m):
    return ((n + m - 1) // m) * m


def _mlp_kernel(x_ref, w1_ref, w2_ref, w3_ref, t_ref, o_ref):
    """Fused 3-layer MLP on one batch tile.

    BN (eval) + biases are pre-folded into (W', t'); hidden/output dims are
    padded to 128 lanes for the MXU, but only the first out_dim (=2) columns
    are stored.  Matmuls accumulate in f32; x is cast to the weight dtype here
    (no wrapper-side cast pass over HBM).
    """
    cdt = w1_ref.dtype
    n1 = w1_ref.shape[1]
    n2 = w2_ref.shape[1]

    x = x_ref[...].astype(cdt)
    h1 = jnp.dot(x, w1_ref[...], preferred_element_type=jnp.float32)
    h1 = jnp.maximum(h1 + t_ref[0:1, :n1], 0.0).astype(cdt)
    h2 = jnp.dot(h1, w2_ref[...], preferred_element_type=jnp.float32)
    h2 = jnp.maximum(h2 + t_ref[1:2, :n2], 0.0).astype(cdt)
    o = jnp.dot(h2, w3_ref[...], preferred_element_type=jnp.float32)
    o = o + t_ref[2:3, : o.shape[-1]]
    # Narrow store: only the real output columns go to HBM (masked vst is free
    # here; the kernel is bandwidth-bound, not slot-bound).
    o_ref[...] = o[:, : o_ref.shape[-1]].astype(o_ref.dtype)


def fold_params(params, *, use_bn, compute_dtype=jnp.float32):
    """Fold eval-mode BN + Linear biases into (W', shift), pad to 128 lanes.

    Call once and reuse across forward calls.  `use_bn=False` reproduces the
    batch==1 skip-BN branch of the PyTorch forward().
    """
    def fold(w, b, bn_w=None, bn_b=None, bn_rm=None, bn_rv=None):
        wt = w.T.astype(jnp.float32)          # [in, out]
        b = b.astype(jnp.float32)
        if use_bn and bn_w is not None:
            s = bn_w / jnp.sqrt(bn_rv + _EPS)
            wt = wt * s[None, :]
            b = b * s + (bn_b - bn_rm * s)
        return wt, b

    w1, t1 = fold(params["fc1_w"], params["fc1_b"], params["bn1_w"],
                  params["bn1_b"], params["bn1_rm"], params["bn1_rv"])
    w2, t2 = fold(params["fc2_w"], params["fc2_b"], params["bn2_w"],
                  params["bn2_b"], params["bn2_rm"], params["bn2_rv"])
    w3, t3 = fold(params["fc3_w"], params["fc3_b"])

    def pad_cols(w, t):
        n = w.shape[1]
        n_pad = _round_up(n, _LANE)
        return (jnp.pad(w, ((0, 0), (0, n_pad - n))),
                jnp.pad(t, (0, n_pad - n)))

    w1, t1 = pad_cols(w1, t1)     # [D, 128],   [128]
    w2, t2 = pad_cols(w2, t2)     # [128, 128], [128]
    w3, t3 = pad_cols(w3, t3)     # [64, 128],  [128]

    # Pad contraction dims of w2/w3 to match the padded previous layer width.
    w2 = jnp.pad(w2, ((0, w1.shape[1] - w2.shape[0]), (0, 0)))
    w3 = jnp.pad(w3, ((0, w2.shape[1] - w3.shape[0]), (0, 0)))

    # Pack the three shift vectors into one resident (3, n_max) f32 array.
    n_max = max(t1.shape[0], t2.shape[0], t3.shape[0])
    t_all = jnp.stack(
        [jnp.pad(t, (0, n_max - t.shape[0])) for t in (t1, t2, t3)], axis=0)

    cdt = compute_dtype
    return dict(w1=w1.astype(cdt), w2=w2.astype(cdt), w3=w3.astype(cdt),
                t=t_all,                               # shifts stay f32
                out_dim=int(params["fc3_w"].shape[0]),
                use_bn=bool(use_bn))


def improved_cnn_forward(x, folded, *, block_m=256, out_dtype=None):
    """Run the fused MLP kernel on x: [B, input_dim] -> [B, out_dim].

    block_m: rows per grid step.  Default 256 (even grid >= 4 at B=1024 so
    both v7x TensorCores pipeline); raise to 1024-2048 on single-TC v5e/v6e.
    out_dtype: output storage dtype (default x.dtype; bf16 halves writeback).
    """
    B, D = x.shape
    out_dim = folded["out_dim"]
    out_dtype = x.dtype if out_dtype is None else out_dtype

    # Enforce the PyTorch batch-size branch against the folded params.
    if folded["use_bn"] and B <= 1:
        raise ValueError("batch==1 requires fold_params(use_bn=False)")
    if (not folded["use_bn"]) and B > 1:
        raise ValueError("batch>1 requires fold_params(use_bn=True)")

    # Only pad the batch to a sublane multiple (<= 7 rows, and only when B is
    # not already 8-aligned).  Ragged B vs block_m is handled by the partial
    # last grid block (masked stores), not by padding to a multiple of tm.
    b_eff = _round_up(B, _SUBLANE)
    xp = x if b_eff == B else jnp.pad(x, ((0, b_eff - B), (0, 0)))

    tm = min(_round_up(block_m, _SUBLANE), b_eff)
    grid = pl.cdiv(b_eff, tm)

    resident = lambda a: pl.BlockSpec(a.shape, lambda i: (0, 0))

    out = pl.pallas_call(
        _mlp_kernel,
        out_shape=jax.ShapeDtypeStruct((b_eff, out_dim), out_dtype),
        grid_spec=pltpu.PrefetchScalarGridSpec(
            num_scalar_prefetch=0,
            grid=(grid,),
            in_specs=[
                pl.BlockSpec((tm, D), lambda i: (i, 0)),     # batch-tiled x
                resident(folded["w1"]),
                resident(folded["w2"]),
                resident(folded["w3"]),
                resident(folded["t"]),
            ],
            out_specs=pl.BlockSpec((tm, out_dim), lambda i: (i, 0)),
        ),
        compiler_params=pltpu.CompilerParams(
            dimension_semantics=("parallel",)),   # shard batch across TCs (v7x)
    )(xp, folded["w1"], folded["w2"], folded["w3"], folded["t"])

    return out if b_eff == B else out[:B]


def init_params(key, input_dim, hidden_dim1=128, hidden_dim2=64):
    """Deterministic parameter init (PyTorch Linear-style uniform bounds)."""
    ks = jax.random.split(key, 10)

    def linear(kw, kb, fan_in, fan_out):
        bound = 1.0 / jnp.sqrt(fan_in)
        w = jax.random.uniform(kw, (fan_out, fan_in), jnp.float32, -bound, bound)
        b = jax.random.uniform(kb, (fan_out,), jnp.float32, -bound, bound)
        return w, b

    fc1_w, fc1_b = linear(ks[0], ks[1], input_dim, hidden_dim1)
    fc2_w, fc2_b = linear(ks[2], ks[3], hidden_dim1, hidden_dim2)
    fc3_w, fc3_b = linear(ks[4], ks[5], hidden_dim2, 2)

    bn1_w = 1.0 + 0.1 * jax.random.normal(ks[6], (hidden_dim1,), jnp.float32)
    bn1_b = 0.1 * jax.random.normal(ks[7], (hidden_dim1,), jnp.float32)
    bn1_rm = 0.05 * jax.random.normal(ks[8], (hidden_dim1,), jnp.float32)
    bn1_rv = jnp.ones((hidden_dim1,), jnp.float32) * 1.2
    bn2_w = 1.0 + 0.1 * jax.random.normal(ks[9], (hidden_dim2,), jnp.float32)
    bn2_b = jnp.zeros((hidden_dim2,), jnp.float32)
    bn2_rm = jnp.zeros((hidden_dim2,), jnp.float32)
    bn2_rv = jnp.ones((hidden_dim2,), jnp.float32)

    return dict(fc1_w=fc1_w, fc1_b=fc1_b, fc2_w=fc2_w, fc2_b=fc2_b,
                fc3_w=fc3_w, fc3_b=fc3_b,
                bn1_w=bn1_w, bn1_b=bn1_b, bn1_rm=bn1_rm, bn1_rv=bn1_rv,
                bn2_w=bn2_w, bn2_b=bn2_b, bn2_rm=bn2_rm, bn2_rv=bn2_rv)


def reference_forward(x, params):
    """Pure-JAX reference replicating the PyTorch eval-mode forward."""
    y = x @ params["fc1_w"].T + params["fc1_b"]
    if x.shape[0] > 1:
        y = ((y - params["bn1_rm"]) / jnp.sqrt(params["bn1_rv"] + _EPS)
             * params["bn1_w"] + params["bn1_b"])
    y = jnp.maximum(y, 0.0)
    y = y @ params["fc2_w"].T + params["fc2_b"]
    if x.shape[0] > 1:
        y = ((y - params["bn2_rm"]) / jnp.sqrt(params["bn2_rv"] + _EPS)
             * params["bn2_w"] + params["bn2_b"])
    y = jnp.maximum(y, 0.0)
    return y @ params["fc3_w"].T + params["fc3_b"]


if __name__ == "__main__":
    key = jax.random.PRNGKey(0)
    k_param, k_x1, k_x2, k_x3, k_x4 = jax.random.split(key, 5)

    input_dim = 16
    params = init_params(k_param, input_dim)

    # Fold / pad weights once per BN mode (and once for the bf16 variant).
    folded_bn = fold_params(params, use_bn=True)
    folded_nobn = fold_params(params, use_bn=False)
    folded_bn_bf16 = fold_params(params, use_bn=True, compute_dtype=jnp.bfloat16)

    # 1) small batch (>1 -> BN path), f32 compute, tight tolerance.
    x = jax.random.normal(k_x1, (2, input_dim), jnp.float32)
    out = jax.block_until_ready(improved_cnn_forward(x, folded_bn))
    ref = reference_forward(x, params)
    assert out.shape == (2, 2)
    assert jnp.allclose(out, ref, atol=1e-4, rtol=1e-4), (out, ref)

    # 2) batch == 1 -> BN is skipped, matching the PyTorch forward().
    x1 = jax.random.normal(k_x2, (1, input_dim), jnp.float32)
    out1 = jax.block_until_ready(improved_cnn_forward(x1, folded_nobn))
    ref1 = reference_forward(x1, params)
    assert out1.shape == (1, 2)
    assert jnp.allclose(out1, ref1, atol=1e-4, rtol=1e-4), (out1, ref1)

    # 3) larger batch: bf16 MXU matmuls + bf16 narrow output, grid of 4
    #    (2 batch-tiled steps per v7x TensorCore), no wrapper cast/pad of x.
    xb = jax.random.normal(k_x3, (1024, input_dim), jnp.float32)
    outb = jax.block_until_ready(
        improved_cnn_forward(xb, folded_bn_bf16, block_m=256,
                             out_dtype=jnp.bfloat16))
    refb = reference_forward(xb, params)
    assert outb.shape == (1024, 2) and outb.dtype == jnp.bfloat16
    assert jnp.allclose(outb.astype(jnp.float32), refb, atol=1e-1, rtol=1e-1)

    # 4) ragged batch (B % block_m != 0): partial last grid block is masked,
    #    no padding of x up to a multiple of block_m.
    xr = jax.random.normal(k_x4, (300, input_dim), jnp.float32)
    outr = jax.block_until_ready(improved_cnn_forward(xr, folded_bn, block_m=128))
    refr = reference_forward(xr, params)
    assert outr.shape == (300, 2)
    assert jnp.allclose(outr, refr, atol=1e-4, rtol=1e-4)

    print("KERNEL_OK")
</pallas_src>

<mosaic_0001>
module attributes {stable_mosaic.version = 11 : i64} {
  func.func @_mlp_kernel(%arg0: i32, %arg1: memref<8x16xf32, #tpu.memory_space<vmem>>, %arg2: memref<16x128xf32, #tpu.memory_space<vmem>>, %arg3: memref<128x128xf32, #tpu.memory_space<vmem>>, %arg4: memref<128x128xf32, #tpu.memory_space<vmem>>, %arg5: memref<3x128xf32, #tpu.memory_space<vmem>>, %arg6: memref<8x2xf32, #tpu.memory_space<vmem>>) attributes {dimension_semantics = [#tpu.dimension_semantics<parallel>], iteration_bounds = array<i64: 1>, scalar_prefetch = 0 : i64, scratch_operands = 0 : i64, tpu.core_type = #tpu.core_type<tc>, window_params = [{transform_indices = @transform_0, window_bounds = array<i64: 8, 16>}, {pipeline_mode = #tpu.pipeline_mode<synchronous>, transform_indices = @transform_1, window_bounds = array<i64: 16, 128>}, {pipeline_mode = #tpu.pipeline_mode<synchronous>, transform_indices = @transform_2, window_bounds = array<i64: 128, 128>}, {pipeline_mode = #tpu.pipeline_mode<synchronous>, transform_indices = @transform_3, window_bounds = array<i64: 128, 128>}, {pipeline_mode = #tpu.pipeline_mode<synchronous>, transform_indices = @transform_4, window_bounds = array<i64: 3, 128>}, {transform_indices = @transform_5, window_bounds = array<i64: 8, 2>}]} {
    %c0 = arith.constant 0 : index
    %c0_0 = arith.constant 0 : index
    %0 = vector.load %arg1[%c0, %c0_0] : memref<8x16xf32, #tpu.memory_space<vmem>>, vector<8x16xf32>
    %c0_1 = arith.constant 0 : index
    %c0_2 = arith.constant 0 : index
    %1 = vector.load %arg2[%c0_1, %c0_2] : memref<16x128xf32, #tpu.memory_space<vmem>>, vector<16x128xf32>
    %cst = arith.constant dense<0.000000e+00> : vector<8x128xf32>
    %2 = tpu.matmul %0, %1, %cst {dimension_numbers = #tpu.dot_dimension_numbers<[1], [0], [0], [1], [0, 0, 1, 1], [], []>} : vector<8x16xf32>, vector<16x128xf32>, vector<8x128xf32> -> vector<8x128xf32>
    %c0_3 = arith.constant 0 : index
    %c0_4 = arith.constant 0 : index
    %3 = vector.load %arg5[%c0_3, %c0_4] : memref<3x128xf32, #tpu.memory_space<vmem>>, vector<1x128xf32>
    %4 = vector.broadcast %3 : vector<1x128xf32> to vector<8x128xf32>
    %5 = arith.addf %2, %4 : vector<8x128xf32>
    %cst_5 = arith.constant 0.000000e+00 : f32
    %6 = vector.broadcast %cst_5 : f32 to vector<8x128xf32>
    %7 = arith.maximumf %5, %6 : vector<8x128xf32>
    %c0_6 = arith.constant 0 : index
    %c0_7 = arith.constant 0 : index
    %8 = vector.load %arg3[%c0_6, %c0_7] : memref<128x128xf32, #tpu.memory_space<vmem>>, vector<128x128xf32>
    %cst_8 = arith.constant dense<0.000000e+00> : vector<8x128xf32>
    %9 = tpu.matmul %7, %8, %cst_8 {dimension_numbers = #tpu.dot_dimension_numbers<[1], [0], [0], [1], [0, 0, 1, 1], [], []>} : vector<8x128xf32>, vector<128x128xf32>, vector<8x128xf32> -> vector<8x128xf32>
    %c1 = arith.constant 1 : index
    %c0_9 = arith.constant 0 : index
    %10 = vector.load %arg5[%c1, %c0_9] : memref<3x128xf32, #tpu.memory_space<vmem>>, vector<1x128xf32>
    %11 = vector.broadcast %10 : vector<1x128xf32> to vector<8x128xf32>
    %12 = arith.addf %9, %11 : vector<8x128xf32>
    %cst_10 = arith.constant 0.000000e+00 : f32
    %13 = vector.broadcast %cst_10 : f32 to vector<8x128xf32>
    %14 = arith.maximumf %12, %13 : vector<8x128xf32>
    %c0_11 = arith.constant 0 : index
    %c0_12 = arith.constant 0 : index
    %15 = vector.load %arg4[%c0_11, %c0_12] : memref<128x128xf32, #tpu.memory_space<vmem>>, vector<128x128xf32>
    %cst_13 = arith.constant dense<0.000000e+00> : vector<8x128xf32>
    %16 = tpu.matmul %14, %15, %cst_13 {dimension_numbers = #tpu.dot_dimension_numbers<[1], [0], [0], [1], [0, 0, 1, 1], [], []>} : vector<8x128xf32>, vector<128x128xf32>, vector<8x128xf32> -> vector<8x128xf32>
    %c2 = arith.constant 2 : index
    %c0_14 = arith.constant 0 : index
    %17 = vector.load %arg5[%c2, %c0_14] : memref<3x128xf32, #tpu.memory_space<vmem>>, vector<1x128xf32>
    %18 = vector.broadcast %17 : vector<1x128xf32> to vector<8x128xf32>
    %19 = arith.addf %16, %18 : vector<8x128xf32>
    %20 = vector.extract_strided_slice %19 {offsets = [0, 0], sizes = [8, 2], strides = [1, 1]} : vector<8x128xf32> to vector<8x2xf32>
    %c0_15 = arith.constant 0 : index
    %c0_16 = arith.constant 0 : index
    %21 = vector.load %arg6[%c0_15, %c0_16] : memref<8x2xf32, #tpu.memory_space<vmem>>, vector<8x2xf32>
    tpu.vector_store %arg6[%c0_15, %c0_16], %20 {strides = array<i32>} : memref<8x2xf32, #tpu.memory_space<vmem>>, vector<8x2xf32>,
    return
  }
  func.func @transform_0(%arg0: i32) -> (i32, i32) {
    %c0_i32 = arith.constant 0 : i32
    %c0_i32_0 = arith.constant 0 : i32
    return %arg0, %c0_i32 : i32, i32
  }
  func.func @transform_1(%arg0: i32) -> (i32, i32) {
    %c0_i32 = arith.constant 0 : i32
    %c0_i32_0 = arith.constant 0 : i32
    %c0_i32_1 = arith.constant 0 : i32
    return %c0_i32, %c0_i32_0 : i32, i32
  }
  func.func @transform_2(%arg0: i32) -> (i32, i32) {
    %c0_i32 = arith.constant 0 : i32
    %c0_i32_0 = arith.constant 0 : i32
    %c0_i32_1 = arith.constant 0 : i32
    return %c0_i32, %c0_i32_0 : i32, i32
  }
  func.func @transform_3(%arg0: i32) -> (i32, i32) {
    %c0_i32 = arith.constant 0 : i32
    %c0_i32_0 = arith.constant 0 : i32
    %c0_i32_1 = arith.constant 0 : i32
    return %c0_i32, %c0_i32_0 : i32, i32
  }
  func.func @transform_4(%arg0: i32) -> (i32, i32) {
    %c0_i32 = arith.constant 0 : i32
    %c0_i32_0 = arith.constant 0 : i32
    %c0_i32_1 = arith.constant 0 : i32
    return %c0_i32, %c0_i32_0 : i32, i32
  }
  func.func @transform_5(%arg0: i32) -> (i32, i32) {
    %c0_i32 = arith.constant 0 : i32
    %c0_i32_0 = arith.constant 0 : i32
    return %arg0, %c0_i32 : i32, i32
  }
}

</mosaic_0001>

<bundles_post_ra>
// kernel: tpu_custom_call.1
= control target key start
LH: loop header
LB: loop body
LE: loop exit
PB: predicated region body
PF: predicated region fallthrough
CT: control target
= control target key end

     0   :  { %10 = vsyncpa [#allocation3], 0  ;;  %s402_s0 = inlined_call_operand.hbm [shape: f32[8,16], index: 0, kind: input, shape index: {}]   ;;  %s403_s1 = inlined_call_operand.hbm [shape: f32[16,128], index: 1, kind: input, shape index: {}]   ;;  %s404_s2 = inlined_call_operand.hbm [shape: f32[128,128], index: 2, kind: input, shape index: {}]   ;;  %s405_s3 = inlined_call_operand.hbm [shape: f32[128,128], index: 3, kind: input, shape index: {}]   ;;  %s406_s4 = inlined_call_operand.hbm [shape: f32[3,128], index: 4, kind: input, shape index: {}]   ;;  %s407_s5 = inlined_call_operand.vmem [shape: f32[8,2], index: 5, kind: output, shape index: {}]  }
   0x1   :  { %11 = vsyncpa [#allocation5], 0  ;;  %s28_s20 = sshll.u32 %s403_s1, 4  ;;  %s29_s20 = int_to_ptr.hbm [resolvable:$true] %s28_s20 }
   0x2   :  { %12 = vsyncpa [#allocation8], 0  ;;  %s347_s21 = smov [#allocation4]   ;;  %s54_s25 = sshll.u32 %s405_s3, 4  ;;  %s55_s25 = int_to_ptr.hbm [resolvable:$true] %s54_s25 }
   0x3   :  { %s30_s22 = sshll.u32 %s347_s21, 4  ;;  %s348_s26 = smov 128   ;;  %s31_s22 = int_to_ptr.vmem [resolvable:$true] %s30_s22 }
   0x4   :  { %s349_s27 = smov 8   ;;  %s350_s28 = smov [#allocation7]  }
   0x5   :  { %36 = dma.hbm_to_vmem [thread:$0]  %s29_s20, 256, %s31_s22, [#allocation5], %s348_s26, %s348_s26, %s349_s27  }
   0x6   :  { %s56_s29 = sshll.u32 %s350_s28, 4  ;;  %s18_s7 = sshll.u32 %s402_s0, 4  ;;  %s57_s29 = int_to_ptr.vmem [resolvable:$true] %s56_s29  ;;  %s19_s7 = int_to_ptr.hbm [resolvable:$true] %s18_s7 }
   0x7   :  { %62 = dma.hbm_to_vmem [thread:$0]  %s55_s25, 2048, %s57_s29, [#allocation8], %s348_s26, %s348_s26, %s349_s27  }
   0x8   :  { %s41_s9 = sshll.u32 %s404_s2, 4  ;;  %s351_s10 = smov [#allocation2]   ;;  %s42_s9 = int_to_ptr.hbm [resolvable:$true] %s41_s9 }
   0x9   :  { %s20_s11 = sshll.u32 %s351_s10, 4  ;;  %s352_s3 = smov [#allocation6]   ;;  %s21_s11 = int_to_ptr.vmem [resolvable:$true] %s20_s11 }
   0xa   :  { %23 = dma.hbm_to_vmem [thread:$0]  %s19_s7, 128, %s21_s11, [#allocation3]  }
   0xb   :  { %s43_s12 = sshll.u32 %s352_s3, 4  ;;  %s68_s15 = sshll.u32 %s406_s4, 4  ;;  %s44_s12 = int_to_ptr.vmem [resolvable:$true] %s43_s12  ;;  %s69_s15 = int_to_ptr.hbm [resolvable:$true] %s68_s15 }
   0xc   :  { %49 = dma.hbm_to_vmem [thread:$0]  %s42_s9, 2048, %s44_s12, [#allocation5], %s348_s26, %s348_s26, %s349_s27  }
   0xd   :  { %s353_s0 = smov [#allocation9]  }
   0xe   :  { %s70_s16 = sshll.u32 %s353_s0, 4  ;;  %s71_s16 = int_to_ptr.vmem [resolvable:$true] %s70_s16 }
   0xf   :  { %73 = dma.hbm_to_vmem [thread:$0]  %s69_s15, 64, %s71_s16, [#allocation8]  }
  0x10   :  { %341 = dma.done.wait [#allocation3], 128  }
  0x11   :  { %342 = vsyncadd [#allocation3], 4294967168 }
  0x12   :  { %343 = dma.done.wait [#allocation5], 2304  }
  0x13   :  { %344 = vsyncadd [#allocation5], 4294964992 }
  0x14   :  { %345 = dma.done.wait [#allocation8], 2112  }
  0x15   :  { %346 = vsyncadd [#allocation8], 4294965184  ;;  %v96_v0 = vld [vmem:[#allocation4 + $0x8] sm:$0xff]  ;;  %v95_v1 = vld [vmem:[#allocation4] sm:$0xff]  ;;  %vm99_vm0 = vcmask 130048   ;;  %vm201_vm1 = vcmask 15360  }
  0x16   :  { %117 = vmatpush.msra.mxu0 %v96_v0  ;;  %v94_v2 = vld [vmem:[#allocation2] sm:$0xff]  ;;  %v139_v3 = vld [vmem:[#allocation6 + $0x78] sm:$0xff]  ;;  %v138_v4 = vld [vmem:[#allocation6 + $0x70] sm:$0xff] }
  0x17   :  { %142 = vmatpush.msra.mxu1 %v139_v3  ;;  %v137_v5 = vld [vmem:[#allocation6 + $0x68] sm:$0xff]  ;;  %v136_v6 = vld [vmem:[#allocation6 + $0x60] sm:$0xff]  ;;  %v135_v7 = vld [vmem:[#allocation6 + $0x58] sm:$0xff] }
  0x18   :  { %118 = vmatpush.msra.mxu0 %v95_v1  ;;  %v134_v8 = vld [vmem:[#allocation6 + $0x50] sm:$0xff]  ;;  %v133_v9 = vld [vmem:[#allocation6 + $0x48] sm:$0xff]  ;;  %v132_v10 = vld [vmem:[#allocation6 + $0x40] sm:$0xff] }
  0x19   :  { %210 = vmatmul.msk.f32.vlgmr.msra.gmra.mxu0 %vm99_vm0, %v94_v2  ;;  %143 = vmatpush.msra.mxu1 %v138_v4  ;;  %v131_v11 = vld [vmem:[#allocation6 + $0x38] sm:$0xff]  ;;  %v130_v12 = vld [vmem:[#allocation6 + $0x30] sm:$0xff]  ;;  %v129_v13 = vld [vmem:[#allocation6 + $0x28] sm:$0xff] }
  0x1a   :  { %v128_v14 = vld [vmem:[#allocation6 + $0x20] sm:$0xff]  ;;  %v127_v15 = vld [vmem:[#allocation6 + $0x18] sm:$0xff]  ;;  %v126_v16 = vld [vmem:[#allocation6 + $0x10] sm:$0xff] }
  0x1b   :  { %144 = vmatpush.msra.mxu1 %v137_v5  ;;  %v125_v17 = vld [vmem:[#allocation6 + $0x8] sm:$0xff]  ;;  %v124_v18 = vld [vmem:[#allocation6] sm:$0xff]  ;;  %v178_v19 = vld [vmem:[#allocation7 + $0x78] sm:$0xff] }
  0x1c   :  { %v177_v20 = vld [vmem:[#allocation7 + $0x70] sm:$0xff]  ;;  %181 = vmatpush.msra.mxu2 %v178_v19  ;;  %v176_v21 = vld [vmem:[#allocation7 + $0x68] sm:$0xff]  ;;  %v175_v22 = vld [vmem:[#allocation7 + $0x60] sm:$0xff] }
  0x1d   :  { %145 = vmatpush.msra.mxu1 %v136_v6  ;;  %v174_v23 = vld [vmem:[#allocation7 + $0x58] sm:$0xff]  ;;  %v173_v24 = vld [vmem:[#allocation7 + $0x50] sm:$0xff]  ;;  %v172_v25 = vld [vmem:[#allocation7 + $0x48] sm:$0xff] }
  0x1e   :  { %182 = vmatpush.msra.mxu2 %v177_v20  ;;  %v171_v26 = vld [vmem:[#allocation7 + $0x40] sm:$0xff]  ;;  %v170_v27 = vld [vmem:[#allocation7 + $0x38] sm:$0xff]  ;;  %v169_v28 = vld [vmem:[#allocation7 + $0x30] sm:$0xff] }
  0x1f   :  { %146 = vmatpush.msra.mxu1 %v135_v7  ;;  %v168_v29 = vld [vmem:[#allocation7 + $0x28] sm:$0xff]  ;;  %v167_v30 = vld [vmem:[#allocation7 + $0x20] sm:$0xff]  ;;  %v166_v31 = vld [vmem:[#allocation7 + $0x18] sm:$0xff] }
  0x20   :  { %183 = vmatpush.msra.mxu2 %v176_v21  ;;  %v218_v32 = vld [vmem:[#allocation9] ss:$0 sm:$0xff]  ;;  %v165_v36 = vld [vmem:[#allocation7 + $0x10] sm:$0xff]  ;;  %v164_v37 = vld [vmem:[#allocation7 + $0x8] sm:$0xff] }
  0x21   :  { %147 = vmatpush.msra.mxu1 %v134_v8  ;;  %v163_v38 = vld [vmem:[#allocation7] sm:$0xff] }
  0x22   :  { %184 = vmatpush.msra.mxu2 %v175_v22  ;;  %v219_v39 = vld [vmem:[#allocation9 + $0x1] ss:$0 sm:$0xff]  ;;  %v220_v43 = vld [vmem:[#allocation9 + $0x2] ss:$0 sm:$0xff] }
  0x23   :  { %148 = vmatpush.msra.mxu1 %v133_v9 }
  0x24   :  { %185 = vmatpush.msra.mxu2 %v174_v23 }
  0x25   :  { %149 = vmatpush.msra.mxu1 %v132_v10 }
  0x26   :  { %186 = vmatpush.msra.mxu2 %v173_v24 }
  0x27   :  { %150 = vmatpush.msra.mxu1 %v131_v11 }
  0x28   :  { %187 = vmatpush.msra.mxu2 %v172_v25 }
  0x29   :  { %151 = vmatpush.msra.mxu1 %v130_v12 }
  0x2a   :  { %188 = vmatpush.msra.mxu2 %v171_v26 }
  0x2b   :  { %152 = vmatpush.msra.mxu1 %v129_v13 }
  0x2c   :  { %189 = vmatpush.msra.mxu2 %v170_v27 }
  0x2d   :  { %153 = vmatpush.msra.mxu1 %v128_v14 }
  0x2e   :  { %190 = vmatpush.msra.mxu2 %v169_v28 }
  0x2f   :  { %154 = vmatpush.msra.mxu1 %v127_v15 }
  0x30   :  { %191 = vmatpush.msra.mxu2 %v168_v29 }
  0x31   :  { %155 = vmatpush.msra.mxu1 %v126_v16 }
  0x32   :  { %192 = vmatpush.msra.mxu2 %v167_v30 }
  0x33   :  { %156 = vmatpush.msra.mxu1 %v125_v17 }
  0x34   :  { %193 = vmatpush.msra.mxu2 %v166_v31 }
  0x35   :  { %157 = vmatpush.msra.mxu1 %v124_v18 }
  0x36   :  { %194 = vmatpush.msra.mxu2 %v165_v36 }
  0x38   :  { %195 = vmatpush.msra.mxu2 %v164_v37 }
  0x3a   :  { %196 = vmatpush.msra.mxu2 %v163_v38 }
  0x96   :  { %v120_v33 = vpop.f32.mrf.mxu0 }
  0x97   :  { %v121_v34 = vadd.f32 %v218_v32, %v120_v33 }
  0x99   :  { %v123_v35 = vmax.f32 %v121_v34, 0.0 }
  0x9b   :  { %158 = vmatmul.f32.vlgmr.msra.gmra.mxu1 %v123_v35 }
 0x118   :  { %v159_v40 = vpop.f32.mrf.mxu1 }
 0x119   :  { %v160_v41 = vadd.f32 %v219_v39, %v159_v40 }
 0x11b   :  { %v162_v42 = vmax.f32 %v160_v41, 0.0 }
 0x11d   :  { %197 = vmatmul.f32.vlgmr.msra.gmra.mxu2 %v162_v42 }
 0x1a0   :  { %v198_v44 = vpop.f32.mrf.mxu2 }
 0x1a1   :  { %v199_v45 = vadd.f32 %v220_v43, %v198_v44 }
 0x1a3   :  { %202 = vst.msk [vmem:[%s407_s5] sm:$0xff] %vm201_vm1, %v199_v45 }
 0x1a4   :  { %207 = vsyncpa [#allocation3], 1 }
 0x1a5   :  { %208 = vsyncpa [#allocation5], 1 }
 0x1a6   :  { %209 = vsyncpa [#allocation8], 1 }

</bundles_post_ra>
